<compile_context>
chip_gen: v7x
topology: tpu7x:2x2x1
jax: 0.10.0
libtpu: 0.0.40
codegen_flags: <defaults>
</compile_context>

<pallas_src>
import math

import jax
import jax.numpy as jnp
from jax.experimental import pallas as pl
from jax.experimental.pallas import tpu as pltpu


def st_embedding_kernel(x_ref, code_ref, w_ref, tab_ref, o_ref):
    # x_ref:    (TILE_R, F)    bf16   flattened patch features for this row tile
    # code_ref: (TILE_R, 1)    int32  packed indices: hod | dow<<5 | node<<8
    # w_ref:    (F, D)         bf16   flattened conv weight (resident)
    # tab_ref:  (K_TAB, D)     f32    stacked [hod+bias; dow; pad; node] table
    # o_ref:    (TILE_R, D)    f32    output rows
    rows = x_ref.shape[0]
    k_tab = tab_ref.shape[0]

    # Patch embedding: conv2d(kernel=(1,T), stride=(1,T)) == one matmul over the
    # flattened (c, t) features.  bf16 operands, f32 accumulation on the MXU.
    patch = jnp.dot(x_ref[...], w_ref[...], preferred_element_type=jnp.float32)

    # Fused node + hour-of-day + day-of-week gather (+ conv bias folded into the
    # hod rows): one 3-hot matrix against the stacked f32 table -> exact f32
    # selection, one extra small-K MXU op per step.
    # NOTE: out-of-range hod/dow values silently gather zeros instead of raising
    # like nn.Embedding; indices are assumed non-negative (as in the module).
    code = code_ref[...]                                   # (rows, 1) int32
    hod_col = code & 31                                    # rows 0..23
    dow_col = 24 + ((code >> 5) & 7)                       # rows 24..30
    node_col = 32 + (code >> 8)                            # rows 32..32+N-1
    lane = jax.lax.broadcasted_iota(jnp.int32, (rows, k_tab), 1)
    sel = (lane == hod_col) | (lane == dow_col) | (lane == node_col)
    gathered = jnp.dot(sel.astype(tab_ref.dtype), tab_ref[...],
                       preferred_element_type=jnp.float32)

    o_ref[...] = (patch + gathered).astype(o_ref.dtype)


def _round_up(x, m):
    return ((x + m - 1) // m) * m


def _vmem_limit_bytes():
    """Per-generation VMEM limit with ~25% headroom (never request 100% of VMEM)."""
    cap = 128 * 1024 * 1024
    try:
        info = pltpu.get_tpu_info()
        cap = int(getattr(info, "vmem_capacity_bytes", cap) or cap)
    except Exception:
        pass
    # v7x (64 MiB physical) -> 48 MiB; v5e/v6e (128 MiB) -> 96 MiB.
    return min(cap * 3 // 4, 100 * 1024 * 1024)


def _pick_tile_rows(n_rows, f, d, k_tab, vmem_limit, max_rows_cap=4096):
    """Largest row tile (multiple of 16) whose double-buffered working set fits."""
    budget = int(vmem_limit * 0.8)          # leave slack for compiler scratch
    resident = f * d * 2 + k_tab * d * 4    # conv weight (bf16) + table (f32)
    per_row = (2 * f * 2                    # x tile, bf16, double-buffered
               + 2 * d * 4                  # out tile, f32, double-buffered
               + 2 * 4                      # packed index column
               + k_tab * 8)                 # iota + one-hot temporaries
    max_rows = max((budget - resident) // per_row, 16)
    max_rows = min(max_rows, max_rows_cap)
    target = min(max_rows, _round_up(n_rows, 16))
    return max(16, (target // 16) * 16)


def st_embedding(x, conv_w, conv_b, node_emb, hod_emb, dow_emb, c_in,
                 out_dtype=jnp.float32):
    """x: [B, T, N, C] float32 with C >= c_in + 2.  Returns [B, N, D]."""
    B, T, N, C = x.shape
    D = conv_w.shape[0]
    F = c_in * T
    R = B * N

    # ---- wrapper-side layout glue (plain JAX) -------------------------------
    # TODO(synk): for production, have the producer emit x already as
    # [B*N, c_in*T] bf16 — this transpose+reshape+cast is an extra HBM pass over
    # x (XLA fuses it into one copy, but it is still ~1.5x the kernel's x read).
    x_flat = (jnp.transpose(x[..., :c_in], (0, 2, 3, 1))
              .reshape(R, F).astype(jnp.bfloat16))                 # [R, F]
    w_flat = conv_w.reshape(D, F).T.astype(jnp.bfloat16)           # [F, D]

    # Stacked f32 gather table: hod(+conv bias) | dow | zero pad | node.
    n_node_rows = _round_up(N, 8)
    k_tab = 32 + n_node_rows
    table = jnp.zeros((k_tab, D), jnp.float32)
    table = table.at[0:24].set(hod_emb.astype(jnp.float32) + conv_b[None, :])
    table = table.at[24:31].set(dow_emb.astype(jnp.float32))
    table = table.at[32:32 + N].set(node_emb.astype(jnp.float32))

    # One packed int32 index per output row.  astype(int32) truncates toward
    # zero, which matches .long() for the non-negative indices this module uses.
    hod = x[:, -1, :, c_in].astype(jnp.int32)                      # [B, N]
    dow = x[:, -1, :, c_in + 1].astype(jnp.int32)                  # [B, N]
    node = jnp.arange(N, dtype=jnp.int32)[None, :]                 # [1, N]
    code = (hod | (dow << 5) | (node << 8)).reshape(R, 1)          # [R, 1]

    # ---- tiling --------------------------------------------------------------
    vmem_limit = _vmem_limit_bytes()
    tile_r = _pick_tile_rows(R, F, D, k_tab, vmem_limit)
    r_pad = _round_up(R, tile_r)
    if r_pad != R:
        x_flat = jnp.pad(x_flat, ((0, r_pad - R), (0, 0)))
        code = jnp.pad(code, ((0, r_pad - R), (0, 0)))

    out = pl.pallas_call(
        st_embedding_kernel,
        out_shape=jax.ShapeDtypeStruct((r_pad, D), out_dtype),
        grid=(r_pad // tile_r,),
        in_specs=[
            pl.BlockSpec((tile_r, F), lambda r: (r, 0)),       # x_flat (bf16)
            pl.BlockSpec((tile_r, 1), lambda r: (r, 0)),       # packed indices
            pl.BlockSpec((F, D), lambda r: (0, 0)),            # conv weight (resident)
            pl.BlockSpec((k_tab, D), lambda r: (0, 0)),        # embedding table (resident)
        ],
        out_specs=pl.BlockSpec((tile_r, D), lambda r: (r, 0)),
        compiler_params=pltpu.CompilerParams(
            dimension_semantics=("parallel",),
            vmem_limit_bytes=vmem_limit,
        ),
    )(x_flat, code, w_flat, table)

    # Drop padded rows (no-op when R is already a tile multiple).
    return out[:R].reshape(B, N, D)


def _xavier_uniform(key, shape):
    fan_in, fan_out = shape[-2], shape[-1]
    bound = math.sqrt(6.0 / (fan_in + fan_out))
    return jax.random.uniform(key, shape, jnp.float32, -bound, bound)


if __name__ == "__main__":
    # Small shapes consistent with the module's forward (seq_len == patch_len).
    B, T, N = 2, 8, 16          # batch, seq_len (= patch_len), num_nodes
    c_in, D = 4, 32             # in_channel, embed_dim
    HOD, DOW = 24, 7

    key = jax.random.PRNGKey(0)
    k_x, k_hi, k_di, k_w, k_b, k_ne, k_he, k_de = jax.random.split(key, 8)

    # Deterministic parameters (shapes from the module's __init__).
    fan_in = c_in * T
    wb = 1.0 / math.sqrt(fan_in)
    conv_w = jax.random.uniform(k_w, (D, c_in, 1, T), jnp.float32, -wb, wb)
    conv_b = jax.random.uniform(k_b, (D,), jnp.float32, -wb, wb)
    node_emb = _xavier_uniform(k_ne, (N, D))
    hod_emb = _xavier_uniform(k_he, (HOD, D))
    dow_emb = _xavier_uniform(k_de, (DOW, D))

    # Input: data channels are random, last two channels hold integer indices.
    x_data = jax.random.normal(k_x, (B, T, N, c_in), jnp.float32)
    hod_idx = jax.random.randint(k_hi, (B, T, N, 1), 0, HOD).astype(jnp.float32)
    dow_idx = jax.random.randint(k_di, (B, T, N, 1), 0, DOW).astype(jnp.float32)
    x = jnp.concatenate([x_data, hod_idx, dow_idx], axis=-1)       # [B, T, N, C]

    out = st_embedding(x, conv_w, conv_b, node_emb, hod_emb, dow_emb, c_in)
    out = jax.block_until_ready(out)

    # Plain-JAX f32 reference (same math as the PyTorch forward).
    x_flat_ref = jnp.transpose(x[..., :c_in], (0, 2, 3, 1)).reshape(B, N, c_in * T)
    patch_ref = x_flat_ref @ conv_w.reshape(D, c_in * T).T + conv_b
    hod_i = x[:, -1, :, c_in].astype(jnp.int32)
    dow_i = x[:, -1, :, c_in + 1].astype(jnp.int32)
    ref = patch_ref + node_emb[None] + hod_emb[hod_i] + dow_emb[dow_i]

    assert out.shape == (B, N, D)
    # Only the patch matmul runs in bf16; embeddings/bias are gathered in f32.
    assert jnp.allclose(out, ref, atol=5e-2, rtol=5e-2)

    print("KERNEL_OK")
</pallas_src>

<mosaic_0001>
module attributes {stable_mosaic.version = 11 : i64} {
  func.func @st_embedding_kernel(%arg0: i32, %arg1: memref<32x32xbf16, #tpu.memory_space<vmem>>, %arg2: memref<32x1xi32, #tpu.memory_space<vmem>>, %arg3: memref<32x32xbf16, #tpu.memory_space<vmem>>, %arg4: memref<48x32xf32, #tpu.memory_space<vmem>>, %arg5: memref<32x32xf32, #tpu.memory_space<vmem>>) attributes {dimension_semantics = [#tpu.dimension_semantics<parallel>], iteration_bounds = array<i64: 1>, scalar_prefetch = 0 : i64, scratch_operands = 0 : i64, tpu.core_type = #tpu.core_type<tc>, window_params = [{transform_indices = @transform_0, window_bounds = array<i64: 32, 32>}, {transform_indices = @transform_1, window_bounds = array<i64: 32, 1>}, {pipeline_mode = #tpu.pipeline_mode<synchronous>, transform_indices = @transform_2, window_bounds = array<i64: 32, 32>}, {pipeline_mode = #tpu.pipeline_mode<synchronous>, transform_indices = @transform_3, window_bounds = array<i64: 48, 32>}, {transform_indices = @transform_4, window_bounds = array<i64: 32, 32>}]} {
    %c0 = arith.constant 0 : index
    %c0_0 = arith.constant 0 : index
    %0 = vector.load %arg1[%c0, %c0_0] : memref<32x32xbf16, #tpu.memory_space<vmem>>, vector<32x32xbf16>
    %c0_1 = arith.constant 0 : index
    %c0_2 = arith.constant 0 : index
    %1 = vector.load %arg3[%c0_1, %c0_2] : memref<32x32xbf16, #tpu.memory_space<vmem>>, vector<32x32xbf16>
    %cst = arith.constant dense<0.000000e+00> : vector<32x32xf32>
    %2 = tpu.matmul %0, %1, %cst {dimension_numbers = #tpu.dot_dimension_numbers<[1], [0], [0], [1], [0, 0, 1, 1], [], []>} : vector<32x32xbf16>, vector<32x32xbf16>, vector<32x32xf32> -> vector<32x32xf32>
    %c0_3 = arith.constant 0 : index
    %c0_4 = arith.constant 0 : index
    %3 = vector.load %arg2[%c0_3, %c0_4] : memref<32x1xi32, #tpu.memory_space<vmem>>, vector<32x1xi32>
    %c31_i32 = arith.constant 31 : i32
    %4 = vector.broadcast %c31_i32 : i32 to vector<32x1xi32>
    %5 = arith.andi %3, %4 : vector<32x1xi32>
    %c5_i32 = arith.constant 5 : i32
    %6 = vector.broadcast %c5_i32 : i32 to vector<32x1xi32>
    %7 = arith.shrsi %3, %6 : vector<32x1xi32>
    %c7_i32 = arith.constant 7 : i32
    %8 = vector.broadcast %c7_i32 : i32 to vector<32x1xi32>
    %9 = arith.andi %7, %8 : vector<32x1xi32>
    %c24_i32 = arith.constant 24 : i32
    %10 = vector.broadcast %c24_i32 : i32 to vector<32x1xi32>
    %11 = arith.addi %10, %9 : vector<32x1xi32>
    %c8_i32 = arith.constant 8 : i32
    %12 = vector.broadcast %c8_i32 : i32 to vector<32x1xi32>
    %13 = arith.shrsi %3, %12 : vector<32x1xi32>
    %c32_i32 = arith.constant 32 : i32
    %14 = vector.broadcast %c32_i32 : i32 to vector<32x1xi32>
    %15 = arith.addi %14, %13 : vector<32x1xi32>
    %16 = tpu.iota {dimensions = array<i32: 1>} : vector<32x48xi32>
    %17 = vector.broadcast %5 : vector<32x1xi32> to vector<32x48xi32>
    %18 = arith.cmpi eq, %16, %17 : vector<32x48xi32>
    %19 = vector.broadcast %11 : vector<32x1xi32> to vector<32x48xi32>
    %20 = arith.cmpi eq, %16, %19 : vector<32x48xi32>
    %21 = arith.ori %18, %20 : vector<32x48xi1>
    %22 = vector.broadcast %15 : vector<32x1xi32> to vector<32x48xi32>
    %23 = arith.cmpi eq, %16, %22 : vector<32x48xi32>
    %24 = arith.ori %21, %23 : vector<32x48xi1>
    %25 = arith.extui %24 : vector<32x48xi1> to vector<32x48xi32>
    %26 = arith.sitofp %25 : vector<32x48xi32> to vector<32x48xf32>
    %c0_5 = arith.constant 0 : index
    %c0_6 = arith.constant 0 : index
    %27 = vector.load %arg4[%c0_5, %c0_6] : memref<48x32xf32, #tpu.memory_space<vmem>>, vector<48x32xf32>
    %cst_7 = arith.constant dense<0.000000e+00> : vector<32x32xf32>
    %28 = tpu.matmul %26, %27, %cst_7 {dimension_numbers = #tpu.dot_dimension_numbers<[1], [0], [0], [1], [0, 0, 1, 1], [], []>} : vector<32x48xf32>, vector<48x32xf32>, vector<32x32xf32> -> vector<32x32xf32>
    %29 = arith.addf %2, %28 : vector<32x32xf32>
    %c0_8 = arith.constant 0 : index
    %c0_9 = arith.constant 0 : index
    %30 = vector.load %arg5[%c0_8, %c0_9] : memref<32x32xf32, #tpu.memory_space<vmem>>, vector<32x32xf32>
    tpu.vector_store %arg5[%c0_8, %c0_9], %29 {strides = array<i32>} : memref<32x32xf32, #tpu.memory_space<vmem>>, vector<32x32xf32>,
    return
  }
  func.func @transform_0(%arg0: i32) -> (i32, i32) {
    %c0_i32 = arith.constant 0 : i32
    %c0_i32_0 = arith.constant 0 : i32
    return %arg0, %c0_i32 : i32, i32
  }
  func.func @transform_1(%arg0: i32) -> (i32, i32) {
    %c0_i32 = arith.constant 0 : i32
    %c0_i32_0 = arith.constant 0 : i32
    return %arg0, %c0_i32 : i32, i32
  }
  func.func @transform_2(%arg0: i32) -> (i32, i32) {
    %c0_i32 = arith.constant 0 : i32
    %c0_i32_0 = arith.constant 0 : i32
    %c0_i32_1 = arith.constant 0 : i32
    return %c0_i32, %c0_i32_0 : i32, i32
  }
  func.func @transform_3(%arg0: i32) -> (i32, i32) {
    %c0_i32 = arith.constant 0 : i32
    %c0_i32_0 = arith.constant 0 : i32
    %c0_i32_1 = arith.constant 0 : i32
    return %c0_i32, %c0_i32_0 : i32, i32
  }
  func.func @transform_4(%arg0: i32) -> (i32, i32) {
    %c0_i32 = arith.constant 0 : i32
    %c0_i32_0 = arith.constant 0 : i32
    return %arg0, %c0_i32 : i32, i32
  }
}

</mosaic_0001>

<bundles_post_ra>
// kernel: tpu_custom_call.1
= control target key start
LH: loop header
LB: loop body
LE: loop exit
PB: predicated region body
PF: predicated region fallthrough
CT: control target
= control target key end

     0   :  { %9 = vsyncpa [#allocation3], 0  ;;  %s704_s0 = inlined_call_operand.hbm [shape: bf16[32,32], index: 0, kind: input, shape index: {}]   ;;  %s705_s1 = inlined_call_operand.hbm [shape: s32[32,1], index: 1, kind: input, shape index: {}]   ;;  %s706_s2 = inlined_call_operand.hbm [shape: bf16[32,32], index: 2, kind: input, shape index: {}]   ;;  %s707_s3 = inlined_call_operand.hbm [shape: f32[48,32], index: 3, kind: input, shape index: {}]   ;;  %s708_s4 = inlined_call_operand.hbm [shape: f32[32,32], index: 4, kind: output, shape index: {}]  }
   0x1   :  { %10 = vsyncpa [#allocation6], 0 }
   0x2   :  { %11 = vsyncpa [#allocation9], 0 }
   0x3   :  { %12 = vsyncpa [#allocation4], 0  ;;  %s582_s15 = smov [#allocation5]   ;;  %s464_s19 = scalar_lea.hbm %s705_s1, 512 }
   0x4   :  { %s30_s16 = sshll.u32 %s582_s15, 4  ;;  %p465_p0 = scmp.ne.s32.totalorder %s705_s1, %s464_s19  ;;  %s31_s16 = int_to_ptr.vmem [resolvable:$true] %s30_s16 }
   0x5   :  { %p468_p1 = scmp.lt.u32.totalorder %s464_s19, %s705_s1 }
   0x7   :  { %p470_p2 = pnand %p468_p1, %p465_p0 }
   0x9   :  { %473 = shalt.err (!%p470_p2)
}
   0xa   :  { %s474_s24 = scalar_lea.vmem %s31_s16, 512  ;;  %p479_p4 = scmp.lt.s32.totalorder %s31_s16, %s31_s16 }
   0xb   :  { %p475_p3 = scmp.ne.s32.totalorder %s31_s16, %s474_s24  ;;  %p480_p5 = scmp.lt.s32.totalorder %s474_s24, %s474_s24 }
   0xd   :  { %p481_p6 = por %p480_p5, %p479_p4 }
   0xf   :  { %p482_p7 = pnand %p481_p6, %p475_p3 }
  0x11   :  { %485 = shalt.err (!%p482_p7)
}
  0x12   :  { %s583_s25 = smov 128   ;;  %s584_s26 = smov 8  }
  0x13   :  { %36 = dma.hbm_to_vmem [thread:$0]  %s705_s1, 512, %s31_s16, [#allocation6], %s583_s25, %s583_s25, %s584_s26  }
  0x14   :  { %s585_s29 = smov [#allocation2]   ;;  %s486_s7 = scalar_lea.hbm %s704_s0, 256 }
  0x15   :  { %s18_s30 = sshll.u32 %s585_s29, 4  ;;  %p487_p8 = scmp.ne.s32.totalorder %s704_s0, %s486_s7  ;;  %s19_s30 = int_to_ptr.vmem [resolvable:$true] %s18_s30 }
  0x16   :  { %p490_p9 = scmp.lt.u32.totalorder %s486_s7, %s704_s0 }
  0x18   :  { %p492_p10 = pnand %p490_p9, %p487_p8 }
  0x1a   :  { %495 = shalt.err (!%p492_p10)
}
  0x1b   :  { %s496_s12 = scalar_lea.vmem %s19_s30, 256  ;;  %p501_p12 = scmp.lt.s32.totalorder %s19_s30, %s19_s30 }
  0x1c   :  { %p497_p11 = scmp.ne.s32.totalorder %s19_s30, %s496_s12  ;;  %p502_p13 = scmp.lt.s32.totalorder %s496_s12, %s496_s12 }
  0x1e   :  { %p503_p0 = por %p502_p13, %p501_p12 }
  0x20   :  { %p504_p1 = pnand %p503_p0, %p497_p11 }
  0x22   :  { %507 = shalt.err (!%p504_p1)
}
  0x23   :  { %s586_s1 = smov 64   ;;  %s587_s13 = smov 4  }
  0x24   :  { %24 = dma.hbm_to_vmem [thread:$0]  %s704_s0, 256, %s19_s30, [#allocation3], %s586_s1, %s586_s1, %s587_s13  }
  0x25   :  { %s588_s16 = smov [#allocation7]   ;;  %s589_s18 = smov [#allocation8]  }
  0x26   :  { %s42_s17 = sshll.u32 %s588_s16, 4  ;;  %s54_s19 = sshll.u32 %s589_s18, 4  ;;  %s43_s17 = int_to_ptr.vmem [resolvable:$true] %s42_s17  ;;  %s645_s19 = int_to_ptr.vmem [resolvable:$true] %s54_s19 }
  0x27   :  { %s508_s22 = scalar_lea.hbm %s706_s2, 256 }
  0x28   :  { %p509_p2 = scmp.ne.s32.totalorder %s706_s2, %s508_s22  ;;  %p512_p3 = scmp.lt.u32.totalorder %s508_s22, %s706_s2 }
  0x2a   :  { %p514_p4 = pnand %p512_p3, %p509_p2 }
  0x2c   :  { %517 = shalt.err (!%p514_p4)
}
  0x2d   :  { %s518_s0 = scalar_lea.vmem %s43_s17, 256  ;;  %p523_p6 = scmp.lt.s32.totalorder %s43_s17, %s43_s17 }
  0x2e   :  { %p519_p5 = scmp.ne.s32.totalorder %s43_s17, %s518_s0  ;;  %p524_p7 = scmp.lt.s32.totalorder %s518_s0, %s518_s0 }
  0x30   :  { %p525_p8 = por %p524_p7, %p523_p6 }
  0x32   :  { %p526_p9 = pnand %p525_p8, %p519_p5 }
  0x34   :  { %529 = shalt.err (!%p526_p9)
}
  0x35   :  { %48 = dma.hbm_to_vmem [thread:$0]  %s706_s2, 256, %s43_s17, [#allocation6], %s586_s1, %s586_s1, %s587_s13  }
  0x36   :  { %s530_s7 = scalar_lea.hbm %s707_s3, 768 }
  0x37   :  { %p531_p10 = scmp.ne.s32.totalorder %s707_s3, %s530_s7  ;;  %p534_p11 = scmp.lt.u32.totalorder %s530_s7, %s707_s3 }
  0x39   :  { %p536_p12 = pnand %p534_p11, %p531_p10 }
  0x3b   :  { %539 = shalt.err (!%p536_p12)
}
  0x3c   :  { %s540_s12 = scalar_lea.vmem %s645_s19, 768  ;;  %p545_p0 = scmp.lt.s32.totalorder %s645_s19, %s645_s19 }
  0x3d   :  { %p541_p13 = scmp.ne.s32.totalorder %s645_s19, %s540_s12  ;;  %p546_p1 = scmp.lt.s32.totalorder %s540_s12, %s540_s12 }
  0x3f   :  { %p547_p2 = por %p546_p1, %p545_p0 }
  0x41   :  { %p548_p3 = pnand %p547_p2, %p541_p13 }
  0x43   :  { %551 = shalt.err (!%p548_p3)
}
  0x44   :  { %60 = dma.hbm_to_vmem [thread:$0]  %s707_s3, 768, %s645_s19, [#allocation9], %s583_s25, %s583_s25, %s584_s26  }
  0x45   :  { %574 = dma.done.wait [#allocation3], 256  }
  0x46   :  { %575 = vsyncadd [#allocation3], 4294967040 }
  0x47   :  { %576 = dma.done.wait [#allocation6], 768  }
  0x48   :  { %577 = vsyncadd [#allocation6], 4294966528 }
  0x49   :  { %578 = dma.done.wait [#allocation9], 768  }
  0x4a   :  { %579 = vsyncadd [#allocation9], 4294966528  ;;  %v590_v0 = vmov 0   ;;  %v83_v1 = vld [vmem:[#allocation5 + $0x8] sm:$0xff]  ;;  %v82_v2 = vld [vmem:[#allocation5] sm:$0xff]  ;;  %vm302_vm0 = vcmask 261120   ;;  %v110_v44 = vlaneseq }
  0x4b   :  { %459 = vset.pattern.permute.xlu1 %v590_v0  ;;  %458 = vset.pattern.permute.xlu0 %v590_v0  ;;  %v84_v3 = vld [vmem:[#allocation5 + $0x10] sm:$0xff]  ;;  %v87_v4 = vand.u32 31, %v83_v1  ;;  %v86_v5 = vand.u32 31, %v82_v2  ;;  %v103_v6 = vshra.s32 %v83_v1, 8  ;;  %v91_v8 = vshra.s32 %v83_v1, 5  ;;  %v85_v13 = vld [vmem:[#allocation5 + $0x18] sm:$0xff] }
  0x4c   :  { %v88_v7 = vand.u32 31, %v84_v3  ;;  %v102_v9 = vshra.s32 %v82_v2, 8  ;;  %v92_v11 = vshra.s32 %v84_v3, 5  ;;  %v90_v12 = vshra.s32 %v82_v2, 5  ;;  %v176_v15 = vld [vmem:[#allocation8] sm:$0xff]  ;;  %v177_v16 = vld [vmem:[#allocation8 + $0x8] sm:$0xff] }
  0x4d   :  { %116 = vperm.xlu1 %459, %v87_v4   ;;  %113 = vperm.xlu0 %458, %v86_v5   ;;  %v107_v10 = vadd.s32 32, %v103_v6  ;;  %v95_v14 = vand.u32 7, %v91_v8  ;;  %v93_v18 = vshra.s32 %v85_v13, 5  ;;  %v435_v19 = vpack.c.bf16 %v177_v16, %v176_v15  ;;  %v460_v23 = vld [vmem:[#allocation7] sm:$0xff]   ;;  %v179_v25 = vld [vmem:[#allocation8 + $0x18] sm:$0xff]  ;;  %v180_v32 = vld [vmem:[#allocation8 + $0x20] sm:$0xff] }
  0x4e   :  { %v106_v17 = vadd.s32 32, %v102_v9  ;;  %v96_v21 = vand.u32 7, %v92_v11  ;;  %v94_v22 = vand.u32 7, %v90_v12  ;;  %427 = vmatprep.subr.bf16.mxu1 %v460_v23  ;;  %v178_v24 = vld [vmem:[#allocation8 + $0x10] sm:$0xff]  ;;  %v461_v30 = vld [vmem:[#allocation7 + $0x8] sm:$0xff]   ;;  %v89_v31 = vand.u32 31, %v85_v13 }
  0x4f   :  { %v99_v20 = vadd.s32 24, %v95_v14  ;;  %436 = vmatprep.subr.bf16.mxu0 %v435_v19  ;;  %428 = vmatpush3.bf16.msra.mxu1 %v460_v23  ;;  %v439_v26 = vpack.c.bf16 %v179_v25, %v178_v24  ;;  %v97_v29 = vand.u32 7, %v93_v18  ;;  %v181_v33 = vld [vmem:[#allocation8 + $0x28] sm:$0xff]  ;;  %v105_v35 = vshra.s32 %v85_v13, 8  ;;  %v462_v38 = vld [vmem:[#allocation2] sm:$0xff]   ;;  %s592_s3 = smov [#allocation10]  }
  0x50   :  { %438 = vmatpush3.bf16.msra.mxu0 %v435_v19  ;;  %v100_v27 = vadd.s32 24, %v96_v21  ;;  %v98_v28 = vadd.s32 24, %v94_v22  ;;  %429 = vmatprep.subr.bf16.mxu1 %v461_v30  ;;  %v104_v36 = vshra.s32 %v84_v3, 8  ;;  %v443_v37 = vpack.c.bf16 %v181_v33, %v180_v32  ;;  %v463_v39 = vld [vmem:[#allocation2 + $0x8] sm:$0xff]   ;;  %s367_s13 = sshll.u32 %s592_s3, 4  ;;  %s368_s13 = int_to_ptr.vmem [resolvable:$true] %s367_s13 }
  0x51   :  { %152 = vperm.xlu1 %459, %v107_v10   ;;  %119 = vperm.xlu0 %458, %v88_v7   ;;  %v101_v34 = vadd.s32 24, %v97_v29  ;;  %v109_v40 = vadd.s32 32, %v105_v35  ;;  %v111_v47 = vand.u32 127, %v110_v44  ;;  %vm182_vm10 = vcmask 392192   ;;  %s552_s14 = scalar_lea.vmem %s368_s13, 512  ;;  %p557_p5 = scmp.lt.s32.totalorder %s368_s13, %s368_s13 }
  0x52   :  { %440 = vmatprep.subr.bf16.mxu0 %v439_v26  ;;  %431 = vmatprep.mubr.msk.bf16.mxu1 %vm302_vm0, %v462_v38  ;;  %v108_v41 = vadd.s32 32, %v104_v36  ;;  %v591_v54 = vmov 0.0   ;;  %p553_p4 = scmp.ne.s32.totalorder %s368_s13, %s552_s14  ;;  %p558_p6 = scmp.lt.s32.totalorder %s552_s14, %s552_s14 }
  0x53   :  { %430 = vmatpush3.bf16.msra.mxu1 %v461_v30 }
  0x54   :  { %442 = vmatpush3.bf16.msra.mxu0 %v439_v26  ;;  %p559_p7 = por %p558_p6, %p557_p5 }
  0x55   :  { %132 = vperm.xlu1 %459, %v99_v20   ;;  %149 = vperm.xlu0 %458, %v106_v17  }
  0x56   :  { %444 = vmatprep.subr.bf16.mxu0 %v443_v37  ;;  %432 = vmatmul.mubr.msk.bf16.vlgmr.msra.gmra.mrb[0].mxu1 %vm302_vm0, %v463_v39  ;;  %p560_p8 = pnand %p559_p7, %p553_p4 }
  0x58   :  { %446 = vmatpush3.bf16.msra.mxu0 %v443_v37 }
  0x59   :  { %135 = vperm.xlu1 %459, %v100_v27   ;;  %129 = vperm.xlu0 %458, %v98_v28  }
  0x5d   :  { %138 = vperm.xlu1 %459, %v101_v34   ;;  %122 = vperm.xlu0 %458, %v89_v31  }
  0x61   :  { %158 = vperm.xlu1 %459, %v109_v40   ;;  %155 = vperm.xlu0 %458, %v108_v41  }
  0xcc   :  { %v117_v42 = vpop.permute.xlu1 %116  ;;  %v114_v43 = vpop.permute.xlu0 %113 }
  0xcd   :  { %vm125_vm2 = vcmp.eq.s32.totalorder %v111_v47, %v117_v42  ;;  %vm124_vm6 = vcmp.eq.s32.totalorder %v111_v47, %v114_v43 }
  0xd0   :  { %v153_v45 = vpop.permute.xlu1 %152  ;;  %v120_v46 = vpop.permute.xlu0 %119 }
  0xd1   :  { %vm161_vm4 = vcmp.eq.s32.totalorder %v111_v47, %v153_v45  ;;  %vm126_vm15 = vcmp.eq.s32.totalorder %v111_v47, %v120_v46 }
  0xd4   :  { %v133_v48 = vpop.permute.xlu1 %132  ;;  %v150_v49 = vpop.permute.xlu0 %149 }
  0xd5   :  { %vm141_vm1 = vcmp.eq.s32.totalorder %v111_v47, %v133_v48  ;;  %vm160_vm8 = vcmp.eq.s32.totalorder %v111_v47, %v150_v49 }
  0xd6   :  { %vm145_vm3 = vmor %vm125_vm2, %vm141_vm1 }
  0xd7   :  { %vm165_vm7 = vmor %vm145_vm3, %vm161_vm4 }
  0xd8   :  { %v136_v50 = vpop.permute.xlu1 %135  ;;  %v130_v51 = vpop.permute.xlu0 %129  ;;  %v382_v56 = vsel %vm165_vm7, 1.0, %v591_v54 }
  0xd9   :  { %vm140_vm5 = vcmp.eq.s32.totalorder %v111_v47, %v130_v51  ;;  %vm142_vm12 = vcmp.eq.s32.totalorder %v111_v47, %v136_v50 }
  0xda   :  { %vm144_vm9 = vmor %vm124_vm6, %vm140_vm5 }
  0xdb   :  { %vm164_vm11 = vmor %vm144_vm9, %vm160_vm8 }
  0xdc   :  { %v139_v52 = vpop.permute.xlu1 %138  ;;  %v123_v53 = vpop.permute.xlu0 %122  ;;  %v381_v55 = vsel %vm164_vm11, 1.0, %v591_v54  ;;  %vm146_vm1 = vmor %vm126_vm15, %vm142_vm12 }
  0xdd   :  { %vm143_vm13 = vcmp.eq.s32.totalorder %v111_v47, %v139_v52  ;;  %vm127_vm14 = vcmp.eq.s32.totalorder %v111_v47, %v123_v53  ;;  %421 = vmatprep.mubr.msk.f32.mxu0 %vm182_vm10, %v381_v55 }
  0xde   :  { %422 = vmatmul.mubr.msk.f32.vlgmr.msra.gmra.mrb[0].mxu0 %vm182_vm10, %v382_v56  ;;  %vm147_vm2 = vmor %vm127_vm14, %vm143_vm13 }
  0xe0   :  { %v159_v57 = vpop.permute.xlu1 %158  ;;  %v156_v58 = vpop.permute.xlu0 %155 }
  0xe1   :  { %vm163_vm3 = vcmp.eq.s32.totalorder %v111_v47, %v159_v57  ;;  %vm162_vm4 = vcmp.eq.s32.totalorder %v111_v47, %v156_v58 }
  0xe2   :  { %vm167_vm5 = vmor %vm147_vm2, %vm163_vm3 }
  0xe3   :  { %v384_v59 = vsel %vm167_vm5, 1.0, %v591_v54  ;;  %vm166_vm6 = vmor %vm146_vm1, %vm162_vm4 }
  0xe4   :  { %v383_v60 = vsel %vm166_vm6, 1.0, %v591_v54 }
  0xe5   :  { %424 = vmatprep.mubr.msk.f32.mxu0 %vm182_vm10, %v383_v60 }
  0xe6   :  { %425 = vmatmul.mubr.msk.f32.gmra.mrb[2].mxu0 %vm182_vm10, %v384_v59 }
 0x129   :  { %v433_v61 = vpop.f32.mrb[0].mxu1 }
 0x12a   :  { %v343_v62 = vpop.f32.mrb[1].mxu1 }
 0x12b   :  { %v434_v63 = vpop.f32.mrb[2].mxu1 }
 0x12c   :  { %v346_v0 = vpop.f32.mrb[3].mxu1 }
 0x1b1   :  { %v423_v1 = vpop.f32.mrb[0].mxu0 }
 0x1b2   :  { %v347_v2 = vadd.f32 %v423_v1, %v346_v0  ;;  %v261_v3 = vpop.f32.mrb[1].mxu0 }
 0x1b3   :  { %v344_v4 = vadd.f32 %v343_v62, %v261_v3 }
 0x1b4   :  { %359 = vst.msk [vmem:[#allocation10 + $0x8] sm:$0xff] %vm302_vm0, %v347_v2 }
 0x1b5   :  { %358 = vst.msk [vmem:[#allocation10] sm:$0xff] %vm302_vm0, %v344_v4 }
 0x1b9   :  { %v426_v5 = vpop.f32.mrb[2].mxu0 }
 0x1ba   :  { %v355_v6 = vadd.f32 %v434_v63, %v426_v5  ;;  %v271_v7 = vpop.f32.mrb[3].mxu0 }
 0x1bb   :  { %v352_v8 = vadd.f32 %v433_v61, %v271_v7 }
 0x1bc   :  { %361 = vst.msk [vmem:[#allocation10 + $0x18] sm:$0xff] %vm302_vm0, %v355_v6 }
 0x1bd   :  { %360 = vst.msk [vmem:[#allocation10 + $0x10] sm:$0xff] %vm302_vm0, %v352_v8 }
 0x1be   :  { %563 = shalt.err (!%p560_p8)
}
 0x1bf   :  { %s564_s17 = scalar_lea.hbm %s708_s4, 512 }
 0x1c0   :  { %p565_p9 = scmp.ne.s32.totalorder %s708_s4, %s564_s17  ;;  %p568_p10 = scmp.lt.u32.totalorder %s564_s17, %s708_s4 }
 0x1c2   :  { %p570_p11 = pnand %p568_p10, %p565_p9 }
 0x1c4   :  { %573 = shalt.err (!%p570_p11)
}
 0x1c5   :  { %373 = dma.vmem_to_hbm [thread:$0]  %s368_s13, 512, %s708_s4, [#allocation4], %s583_s25, %s583_s25, %s584_s26  }
 0x1c6   :  { %580 = dma.done.wait [#allocation4], 512  }
 0x1c7   :  { %581 = vsyncadd [#allocation4], 4294966784 }
 0x1c8   :  { %377 = vsyncpa [#allocation3], 1 }
 0x1c9   :  { %378 = vsyncpa [#allocation6], 1 }
 0x1ca   :  { %379 = vsyncpa [#allocation9], 1 }
 0x1cb   :  { %380 = vsyncpa [#allocation4], 1 }

</bundles_post_ra>
